<compile_context>
chip_gen: v5e
topology: v5e:2x2
jax: 0.10.0
libtpu: 0.0.40
codegen_flags: <defaults>
</compile_context>

<pallas_src>
import jax
import jax.numpy as jnp
from jax.experimental import pallas as pl
from jax.experimental.pallas import tpu as pltpu


def _round_up(n, m):
    return ((n + m - 1) // m) * m


def leadgen_kernel(x_ref, w1_ref, b1_ref, w2_ref, b2_ref, wh_ref, bh_ref, o_ref):
    # x tile and weights arrive in bf16; all accumulation / epilogue in f32.
    x = x_ref[...]                                                   # (TB, in) bf16
    # backbone layer 1: Linear + ReLU  (Dropout = identity in eval)
    h1 = jnp.dot(x, w1_ref[...], preferred_element_type=jnp.float32) + b1_ref[...]
    h1 = jnp.maximum(h1, 0.0)
    # backbone layer 2: Linear + ReLU
    h2 = jnp.dot(h1.astype(jnp.bfloat16), w2_ref[...],
                 preferred_element_type=jnp.float32) + b2_ref[...]
    h2 = jnp.maximum(h2, 0.0)
    # fused heads: (hidden, 3) -> columns [ctr, cpc, conv]
    logits = jnp.dot(h2.astype(jnp.bfloat16), wh_ref[...],
                     preferred_element_type=jnp.float32) + bh_ref[...]
    sig = jax.nn.sigmoid(logits)
    col = jax.lax.broadcasted_iota(jnp.int32, logits.shape, 1)
    # sigmoid on ctr (col 0) and conv (col 2), identity on cpc (col 1)
    o_ref[...] = jnp.where(col == 1, logits, sig).astype(o_ref.dtype)


def leadgen_forward(x, params, block_batch=1024):
    """x: (B, input_dim) float32.  Returns (B, 3) float32 [ctr, cpc, conv]."""
    w1, b1, w2, b2, wh, bh = params
    B, in_dim = x.shape
    hidden = w1.shape[1]

    # Batch tile: multiple of 8 sublanes, capped at block_batch, >= B if tiny.
    TB = min(block_batch, _round_up(B, 8))
    B_pad = _round_up(B, TB)
    if B_pad != B:
        x = jnp.pad(x, ((0, B_pad - B), (0, 0)))
    grid = (B_pad // TB,)

    # bf16 matmul operands (halves dominant HBM traffic, native MXU rate);
    # biases stay f32 so the epilogue runs f32 on every generation.
    x_bf = x.astype(jnp.bfloat16)
    w1_bf = w1.astype(jnp.bfloat16)
    w2_bf = w2.astype(jnp.bfloat16)
    wh_bf = wh.astype(jnp.bfloat16)

    # x / out tiles march with the grid; weights are resident (constant block).
    in_specs = [
        pl.BlockSpec((TB, in_dim), lambda i: (i, 0)),        # x tile
        pl.BlockSpec((in_dim, hidden), lambda i: (0, 0)),    # W1 (resident)
        pl.BlockSpec((1, hidden), lambda i: (0, 0)),         # b1
        pl.BlockSpec((hidden, hidden), lambda i: (0, 0)),    # W2
        pl.BlockSpec((1, hidden), lambda i: (0, 0)),         # b2
        pl.BlockSpec((hidden, 3), lambda i: (0, 0)),         # Wh (fused heads)
        pl.BlockSpec((1, 3), lambda i: (0, 0)),              # bh
    ]
    out_spec = pl.BlockSpec((TB, 3), lambda i: (i, 0))

    flops = 2 * B_pad * (in_dim * hidden + hidden * hidden + hidden * 3)
    bytes_accessed = (
        B_pad * in_dim * 2                                           # x (bf16)
        + (in_dim * hidden + hidden * hidden + hidden * 3) * 2       # weights (bf16)
        + (2 * hidden + 3) * 4                                       # biases (f32)
        + B_pad * 3 * 4                                              # output (f32)
    )

    out = pl.pallas_call(
        leadgen_kernel,
        out_shape=jax.ShapeDtypeStruct((B_pad, 3), jnp.float32),
        grid=grid,
        in_specs=in_specs,
        out_specs=out_spec,
        compiler_params=pltpu.CompilerParams(
            dimension_semantics=("parallel",),        # v7x: shard tiles over 2 TCs
            vmem_limit_bytes=32 * 1024 * 1024,        # explicit; safe on v7x's 64 MiB
        ),
        cost_estimate=pl.CostEstimate(
            flops=flops,
            transcendentals=3 * B_pad,                # sigmoid on the (TB,3) logits
            bytes_accessed=bytes_accessed,
        ),
    )(x_bf, w1_bf, b1, w2_bf, b2, wh_bf, bh)

    return out[:B]


def init_params(key, input_dim, hidden_dim=64):
    """Deterministic synthetic parameters (shapes match the nn.Module)."""
    k1, k2, k3, k4, k5 = jax.random.split(key, 5)
    # stored pre-transposed: (in, out)
    w1 = jax.random.normal(k1, (input_dim, hidden_dim), jnp.float32) * 0.1
    b1 = jax.random.normal(k2, (1, hidden_dim), jnp.float32) * 0.01
    w2 = jax.random.normal(k3, (hidden_dim, hidden_dim), jnp.float32) * 0.1
    b2 = jax.random.normal(k4, (1, hidden_dim), jnp.float32) * 0.01
    # three (hidden, 1) heads packed into a single (hidden, 3) matrix
    wh = jax.random.normal(k5, (hidden_dim, 3), jnp.float32) * 0.1
    bh = jnp.zeros((1, 3), jnp.float32)
    return w1, b1, w2, b2, wh, bh


def reference_forward(x, params):
    """Pure-JAX f32 reference for correctness check."""
    w1, b1, w2, b2, wh, bh = params
    h1 = jnp.maximum(x @ w1 + b1, 0.0)
    h2 = jnp.maximum(h1 @ w2 + b2, 0.0)
    logits = h2 @ wh + bh
    ctr = jax.nn.sigmoid(logits[:, 0:1])
    cpc = logits[:, 1:2]
    conv = jax.nn.sigmoid(logits[:, 2:3])
    return jnp.concatenate([ctr, cpc, conv], axis=1)


if __name__ == "__main__":
    key = jax.random.PRNGKey(0)
    k_x, k_p = jax.random.split(key)

    batch, input_dim, hidden_dim = 8, 16, 64
    x = jax.random.normal(k_x, (batch, input_dim), jnp.float32)
    params = init_params(k_p, input_dim, hidden_dim)

    out = leadgen_forward(x, params)
    out = jax.block_until_ready(out)

    ref = reference_forward(x, params)
    assert out.shape == (batch, 3)
    # bf16 matmul operands with f32 accumulation -> ~1e-3 relative error budget.
    assert jnp.allclose(out, ref, atol=2e-2, rtol=2e-2), "mismatch vs reference"
    print("KERNEL_OK")
</pallas_src>

<mosaic_0001>
module attributes {stable_mosaic.version = 11 : i64} {
  func.func @leadgen_kernel(%arg0: i32, %arg1: memref<8x16xbf16, #tpu.memory_space<vmem>>, %arg2: memref<16x64xbf16, #tpu.memory_space<vmem>>, %arg3: memref<1x64xf32, #tpu.memory_space<vmem>>, %arg4: memref<64x64xbf16, #tpu.memory_space<vmem>>, %arg5: memref<1x64xf32, #tpu.memory_space<vmem>>, %arg6: memref<64x3xbf16, #tpu.memory_space<vmem>>, %arg7: memref<1x3xf32, #tpu.memory_space<vmem>>, %arg8: memref<8x3xf32, #tpu.memory_space<vmem>>) attributes {dimension_semantics = [#tpu.dimension_semantics<parallel>], iteration_bounds = array<i64: 1>, scalar_prefetch = 0 : i64, scratch_operands = 0 : i64, tpu.core_type = #tpu.core_type<tc>, window_params = [{transform_indices = @transform_0, window_bounds = array<i64: 8, 16>}, {pipeline_mode = #tpu.pipeline_mode<synchronous>, transform_indices = @transform_1, window_bounds = array<i64: 16, 64>}, {pipeline_mode = #tpu.pipeline_mode<synchronous>, transform_indices = @transform_2, window_bounds = array<i64: 1, 64>}, {pipeline_mode = #tpu.pipeline_mode<synchronous>, transform_indices = @transform_3, window_bounds = array<i64: 64, 64>}, {pipeline_mode = #tpu.pipeline_mode<synchronous>, transform_indices = @transform_4, window_bounds = array<i64: 1, 64>}, {pipeline_mode = #tpu.pipeline_mode<synchronous>, transform_indices = @transform_5, window_bounds = array<i64: 64, 3>}, {pipeline_mode = #tpu.pipeline_mode<synchronous>, transform_indices = @transform_6, window_bounds = array<i64: 1, 3>}, {transform_indices = @transform_7, window_bounds = array<i64: 8, 3>}]} {
    %c0 = arith.constant 0 : index
    %c0_0 = arith.constant 0 : index
    %0 = vector.load %arg1[%c0, %c0_0] : memref<8x16xbf16, #tpu.memory_space<vmem>>, vector<8x16xbf16>
    %c0_1 = arith.constant 0 : index
    %c0_2 = arith.constant 0 : index
    %1 = vector.load %arg2[%c0_1, %c0_2] : memref<16x64xbf16, #tpu.memory_space<vmem>>, vector<16x64xbf16>
    %cst = arith.constant dense<0.000000e+00> : vector<8x64xf32>
    %2 = tpu.matmul %0, %1, %cst {dimension_numbers = #tpu.dot_dimension_numbers<[1], [0], [0], [1], [0, 0, 1, 1], [], []>} : vector<8x16xbf16>, vector<16x64xbf16>, vector<8x64xf32> -> vector<8x64xf32>
    %c0_3 = arith.constant 0 : index
    %c0_4 = arith.constant 0 : index
    %3 = vector.load %arg3[%c0_3, %c0_4] : memref<1x64xf32, #tpu.memory_space<vmem>>, vector<1x64xf32>
    %4 = vector.broadcast %3 : vector<1x64xf32> to vector<8x64xf32>
    %5 = arith.addf %2, %4 : vector<8x64xf32>
    %cst_5 = arith.constant 0.000000e+00 : f32
    %6 = vector.broadcast %cst_5 : f32 to vector<8x64xf32>
    %7 = arith.maximumf %5, %6 : vector<8x64xf32>
    %8 = arith.truncf %7 : vector<8x64xf32> to vector<8x64xbf16>
    %c0_6 = arith.constant 0 : index
    %c0_7 = arith.constant 0 : index
    %9 = vector.load %arg4[%c0_6, %c0_7] : memref<64x64xbf16, #tpu.memory_space<vmem>>, vector<64x64xbf16>
    %cst_8 = arith.constant dense<0.000000e+00> : vector<8x64xf32>
    %10 = tpu.matmul %8, %9, %cst_8 {dimension_numbers = #tpu.dot_dimension_numbers<[1], [0], [0], [1], [0, 0, 1, 1], [], []>} : vector<8x64xbf16>, vector<64x64xbf16>, vector<8x64xf32> -> vector<8x64xf32>
    %c0_9 = arith.constant 0 : index
    %c0_10 = arith.constant 0 : index
    %11 = vector.load %arg5[%c0_9, %c0_10] : memref<1x64xf32, #tpu.memory_space<vmem>>, vector<1x64xf32>
    %12 = vector.broadcast %11 : vector<1x64xf32> to vector<8x64xf32>
    %13 = arith.addf %10, %12 : vector<8x64xf32>
    %cst_11 = arith.constant 0.000000e+00 : f32
    %14 = vector.broadcast %cst_11 : f32 to vector<8x64xf32>
    %15 = arith.maximumf %13, %14 : vector<8x64xf32>
    %16 = arith.truncf %15 : vector<8x64xf32> to vector<8x64xbf16>
    %c0_12 = arith.constant 0 : index
    %c0_13 = arith.constant 0 : index
    %17 = vector.load %arg6[%c0_12, %c0_13] : memref<64x3xbf16, #tpu.memory_space<vmem>>, vector<64x3xbf16>
    %cst_14 = arith.constant dense<0.000000e+00> : vector<8x3xf32>
    %18 = tpu.matmul %16, %17, %cst_14 {dimension_numbers = #tpu.dot_dimension_numbers<[1], [0], [0], [1], [0, 0, 1, 1], [], []>} : vector<8x64xbf16>, vector<64x3xbf16>, vector<8x3xf32> -> vector<8x3xf32>
    %c0_15 = arith.constant 0 : index
    %c0_16 = arith.constant 0 : index
    %19 = vector.load %arg7[%c0_15, %c0_16] : memref<1x3xf32, #tpu.memory_space<vmem>>, vector<1x3xf32>
    %20 = vector.broadcast %19 : vector<1x3xf32> to vector<8x3xf32>
    %21 = arith.addf %18, %20 : vector<8x3xf32>
    %22 = arith.negf %21 : vector<8x3xf32>
    %23 = math.exp %22 : vector<8x3xf32>
    %cst_17 = arith.constant 1.000000e+00 : f32
    %24 = vector.broadcast %cst_17 : f32 to vector<8x3xf32>
    %25 = arith.addf %24, %23 : vector<8x3xf32>
    %26 = arith.divf %24, %25 : vector<8x3xf32>
    %27 = tpu.iota {dimensions = array<i32: 1>} : vector<8x3xi32>
    %c1_i32 = arith.constant 1 : i32
    %28 = vector.broadcast %c1_i32 : i32 to vector<8x3xi32>
    %29 = arith.cmpi eq, %27, %28 : vector<8x3xi32>
    %30 = arith.select %29, %21, %26 : vector<8x3xi1>, vector<8x3xf32>
    %c0_18 = arith.constant 0 : index
    %c0_19 = arith.constant 0 : index
    %31 = vector.load %arg8[%c0_18, %c0_19] : memref<8x3xf32, #tpu.memory_space<vmem>>, vector<8x3xf32>
    tpu.vector_store %arg8[%c0_18, %c0_19], %30 {strides = array<i32>} : memref<8x3xf32, #tpu.memory_space<vmem>>, vector<8x3xf32>,
    return
  }
  func.func @transform_0(%arg0: i32) -> (i32, i32) {
    %c0_i32 = arith.constant 0 : i32
    %c0_i32_0 = arith.constant 0 : i32
    return %arg0, %c0_i32 : i32, i32
  }
  func.func @transform_1(%arg0: i32) -> (i32, i32) {
    %c0_i32 = arith.constant 0 : i32
    %c0_i32_0 = arith.constant 0 : i32
    %c0_i32_1 = arith.constant 0 : i32
    return %c0_i32, %c0_i32_0 : i32, i32
  }
  func.func @transform_2(%arg0: i32) -> (i32, i32) {
    %c0_i32 = arith.constant 0 : i32
    %c0_i32_0 = arith.constant 0 : i32
    %c0_i32_1 = arith.constant 0 : i32
    return %c0_i32, %c0_i32_0 : i32, i32
  }
  func.func @transform_3(%arg0: i32) -> (i32, i32) {
    %c0_i32 = arith.constant 0 : i32
    %c0_i32_0 = arith.constant 0 : i32
    %c0_i32_1 = arith.constant 0 : i32
    return %c0_i32, %c0_i32_0 : i32, i32
  }
  func.func @transform_4(%arg0: i32) -> (i32, i32) {
    %c0_i32 = arith.constant 0 : i32
    %c0_i32_0 = arith.constant 0 : i32
    %c0_i32_1 = arith.constant 0 : i32
    return %c0_i32, %c0_i32_0 : i32, i32
  }
  func.func @transform_5(%arg0: i32) -> (i32, i32) {
    %c0_i32 = arith.constant 0 : i32
    %c0_i32_0 = arith.constant 0 : i32
    %c0_i32_1 = arith.constant 0 : i32
    return %c0_i32, %c0_i32_0 : i32, i32
  }
  func.func @transform_6(%arg0: i32) -> (i32, i32) {
    %c0_i32 = arith.constant 0 : i32
    %c0_i32_0 = arith.constant 0 : i32
    %c0_i32_1 = arith.constant 0 : i32
    return %c0_i32, %c0_i32_0 : i32, i32
  }
  func.func @transform_7(%arg0: i32) -> (i32, i32) {
    %c0_i32 = arith.constant 0 : i32
    %c0_i32_0 = arith.constant 0 : i32
    return %arg0, %c0_i32 : i32, i32
  }
}

</mosaic_0001>

<bundles_post_ra>
// kernel: tpu_custom_call.1
= control target key start
LH: loop header
LB: loop body
LE: loop exit
PB: predicated region body
PF: predicated region fallthrough
CT: control target
= control target key end

     0   :  { %12 = vsyncpa [#allocation3], 0  ;;  %s464_s0 = inlined_call_operand.vmem [shape: bf16[8,16], index: 0, kind: input, shape index: {}]   ;;  %s465_s1 = inlined_call_operand.hbm [shape: bf16[16,64], index: 1, kind: input, shape index: {}]   ;;  %s466_s2 = inlined_call_operand.hbm [shape: f32[1,64], index: 2, kind: input, shape index: {}]   ;;  %s467_s3 = inlined_call_operand.vmem [shape: bf16[64,64], index: 3, kind: input, shape index: {}]   ;;  %s468_s4 = inlined_call_operand.hbm [shape: f32[1,64], index: 4, kind: input, shape index: {}]   ;;  %s469_s5 = inlined_call_operand.vmem [shape: bf16[64,3], index: 5, kind: input, shape index: {}]   ;;  %s470_s6 = inlined_call_operand.vmem [shape: f32[1,3], index: 6, kind: input, shape index: {}]   ;;  %s471_s7 = inlined_call_operand.vmem [shape: f32[8,3], index: 7, kind: output, shape index: {}]  }
   0x1   :  { %13 = vsyncpa [#allocation5], 0  ;;  %s34_s26 = sshll.u32 %s466_s2, 4  ;;  %s377_s27 = smov [#allocation4]   ;;  %s35_s26 = int_to_ptr.hbm [resolvable:$true] %s34_s26 }
   0x2   :  { %s36_s28 = sshll.u32 %s377_s27, 4  ;;  %s20_s8 = sshll.u32 %s465_s1, 4  ;;  %s37_s28 = int_to_ptr.vmem [resolvable:$true] %s36_s28  ;;  %s21_s8 = int_to_ptr.hbm [resolvable:$true] %s20_s8 }
   0x3   :  { %39 = dma.hbm_to_vmem [thread:$0]  %s35_s26, 16, %s37_s28, [#allocation5]  }
   0x4   :  { %s378_s9 = smov [#allocation2]   ;;  %s379_s11 = smov 64  }
   0x5   :  { %s22_s10 = sshll.u32 %s378_s9, 4  ;;  %s380_s12 = smov 4   ;;  %s23_s10 = int_to_ptr.vmem [resolvable:$true] %s22_s10 }
   0x6   :  { %28 = dma.hbm_to_vmem [thread:$0]  %s21_s8, 128, %s23_s10, [#allocation3], %s379_s11, %s379_s11, %s380_s12  }
   0x7   :  { %s47_s2 = sshll.u32 %s468_s4, 4  ;;  %s381_s15 = smov [#allocation6]   ;;  %s48_s2 = int_to_ptr.hbm [resolvable:$true] %s47_s2 }
   0x8   :  { %s49_s16 = sshll.u32 %s381_s15, 4  ;;  %s50_s16 = int_to_ptr.vmem [resolvable:$true] %s49_s16 }
   0x9   :  { %52 = dma.hbm_to_vmem [thread:$0]  %s48_s2, 16, %s50_s16, [#allocation5]  }
   0xa   :  { %373 = dma.done.wait [#allocation3], 128  }
   0xb   :  { %374 = vsyncadd [#allocation3], 4294967168 }
   0xc   :  { %375 = dma.done.wait [#allocation5], 32  }
   0xd   :  { %376 = vsyncadd [#allocation5], 4294967264  ;;  %v280_v0 = vld [vmem:[#allocation2] sm:$0xff]  ;;  %v284_v1 = vld [vmem:[%s467_s3 + $0x18] sm:$0xff]  ;;  %vm83_vm0 = vcmask 130048   ;;  %vm138_vm1 = vcmask 523264   ;;  %v228_v30 = vlaneseq }
   0xe   :  { %v70_v2 = vld [vmem:[%s464_s0] sm:$0xf]  ;;  %94 = vmatpush.bf16.msra.mxu0 %v280_v0  ;;  %146 = vmatpush.bf16.msra.mxu1 %v284_v1  ;;  %v283_v3 = vld [vmem:[%s467_s3 + $0x10] sm:$0xff]  ;;  %v282_v4 = vld [vmem:[%s467_s3 + $0x8] sm:$0xff]  ;;  %vm232_vm7 = vcmask 23552  }
   0xf   :  { %v281_v5 = vld [vmem:[%s467_s3] sm:$0xff]  ;;  %v288_v6 = vld [vmem:[%s469_s5 + $0x18] sm:$0xff]  ;;  %v287_v7 = vld [vmem:[%s469_s5 + $0x10] sm:$0xff]  ;;  %v229_v34 = vand.u32 127, %v228_v30 }
  0x10   :  { %200 = vmatpush.bf16.msra.mxu2 %v288_v6  ;;  %v294_v8 = vld [vmem:[#allocation4] ss:$0 sm:$0xff]  ;;  %v285_v15 = vld [vmem:[%s469_s5] sm:$0xff]  ;;  %v295_v16 = vld [vmem:[#allocation6] ss:$0 sm:$0xff] }
  0x11   :  { %244 = vmatmul.msk.bf16.vlgmr.msra.gmra.mxu0 %vm83_vm0, %v70_v2  ;;  %v286_v14 = vld [vmem:[%s469_s5 + $0x8] sm:$0xff]  ;;  %v296_v22 = vld [vmem:[%s470_s6] ss:$0 sm:$0xff]  ;;  %vm230_vm5 = vcmp.eq.s32.totalorder %v229_v34, 1 }
  0x12   :  { %147 = vmatpush.bf16.msra.mxu1 %v283_v3 }
  0x14   :  { %201 = vmatpush.bf16.msra.mxu2 %v287_v7 }
  0x16   :  { %148 = vmatpush.bf16.msra.mxu1 %v282_v4 }
  0x18   :  { %202 = vmatpush.bf16.msra.mxu2 %v286_v14 }
  0x1a   :  { %149 = vmatpush.bf16.msra.mxu1 %v281_v5 }
  0x1c   :  { %203 = vmatpush.bf16.msra.mxu2 %v285_v15 }
  0x8e   :  { %v96_v9 = vpop.f32.mrf.mxu0 }
  0x8f   :  { %v97_v10 = vadd.f32 %v294_v8, %v96_v9 }
  0x91   :  { %v100_v11 = vmax.f32 %v97_v10, 0.0 }
  0x93   :  { %v101_v12 = vpack.c.bf16 %v100_v11, %v100_v11 }
  0x95   :  { %261 = vmatmul.msk.bf16.vlgmr.msra.gmra.mxu1 %vm138_vm1, %v101_v12 }
  0x96   :  { %v98_v13 = vpop.f32.mrf.mxu0 }
 0x112   :  { %v151_v17 = vpop.f32.mrf.mxu1 }
 0x113   :  { %v152_v18 = vadd.f32 %v295_v16, %v151_v17 }
 0x115   :  { %v155_v19 = vmax.f32 %v152_v18, 0.0 }
 0x117   :  { %v156_v20 = vpack.c.bf16 %v155_v19, %v155_v19 }
 0x119   :  { %278 = vmatmul.msk.bf16.vlgmr.msra.gmra.mxu2 %vm138_vm1, %v156_v20 }
 0x11a   :  { %v153_v21 = vpop.f32.mrf.mxu1 }
 0x19c   :  { %v205_v23 = vpop.f32.mrf.mxu2 }
 0x19d   :  { %v206_v24 = vadd.f32 %v296_v22, %v205_v23 }
 0x19f   :  { %v279_v25 = vmul.f32 -1.442695, %v206_v24 }
 0x1a1   :  { %297 = vpow2.f32 %v279_v25 }
 0x1a4   :  { %v207_v26 = vpop.f32.mrf.mxu2 }
 0x1a7   :  { %v298_v27 = vpop.eup %297 }
 0x1a8   :  { %v212_v28 = vadd.f32 1.0, %v298_v27 }
 0x1aa   :  { %299 = vrcp.f32 %v212_v28  ;;  %v224_v33 = vand.u32 2147483648, %v212_v28  ;;  %v222_v36 = vand.u32 2147483647, %v212_v28  ;;  %vm218_vm3 = vweird.f32 %v212_v28 }
 0x1ac   :  { %v225_v38 = vor.u32 1.1754944e-38, %v224_v33  ;;  %vm223_vm6 = vcmp.eq.f32.partialorder %v222_v36, 8.507059e+37 }
 0x1b0   :  { %v300_v29 = vpop.eup %299 }
 0x1b1   :  { %v214_v31 = vmul.f32 %v300_v29, %v212_v28  ;;  %vm219_vm2 = vweird.f32 %v300_v29 }
 0x1b2   :  { %vm220_vm4 = vmor %vm218_vm3, %vm219_vm2 }
 0x1b3   :  { %v215_v32 = vsub.f32 1.0, %v214_v31 }
 0x1b5   :  { %v216_v35 = vmul.f32 %v300_v29, %v215_v32 }
 0x1b7   :  { %v217_v37 = vadd.f32 %v300_v29, %v216_v35 }
 0x1b9   :  { %v221_v39 = vsel %vm220_vm4, %v300_v29, %v217_v37 }
 0x1ba   :  { %v226_v40 = vsel %vm223_vm6, %v225_v38, %v221_v39 }
 0x1bb   :  { %v231_v41 = vsel %vm230_vm5, %v206_v24, %v226_v40 }
 0x1bc   :  { %233 = vst.msk [vmem:[%s471_s7] sm:$0xff] %vm232_vm7, %v231_v41 }
 0x1bd   :  { %238 = vsyncpa [#allocation3], 1 }
 0x1be   :  { %239 = vsyncpa [#allocation5], 1 }

</bundles_post_ra>
